<compile_context>
chip_gen: v6e
topology: v6e:2x2x1
jax: 0.10.0
libtpu: 0.0.40
codegen_flags: <defaults>
</compile_context>

<pallas_src>
import functools

import numpy as np
import jax
import jax.numpy as jnp
from jax import lax
from jax.experimental import pallas as pl
from jax.experimental.pallas import tpu as pltpu


def _td_conv2d_kernel(x_ref, w_ref, b_ref, o_ref):
    """One lane-dense matmul per grid step.

    x_ref: (BN*Ho, KH*W*Cin)   kh-folded, pre-padded input rows
    w_ref: (KH*W*Cin, Wo*Cout) banded weights (kw taps + horiz. pad folded in)
    b_ref: (1, Wo*Cout)        bias tiled across the lane dim
    o_ref: (BN*Ho, Wo*Cout)    lane-dense output rows
    """
    acc = jnp.dot(x_ref[...], w_ref[...], preferred_element_type=jnp.float32)
    o_ref[...] = (acc + b_ref[...]).astype(o_ref.dtype)


def _banded_weights(w, W, Wo, padding):
    """Fold kw taps + horizontal zero-pad into banded matrices.

    w: (KH, KW, Cin, Cout) HWIO  ->  (KH*W*Cin, Wo*Cout)
    """
    KH, KW, Cin, Cout = w.shape
    sel = np.zeros((KW, W, Wo), np.float32)
    for kw in range(KW):
        for wo in range(Wo):
            wi = wo + kw - padding
            if 0 <= wi < W:          # out-of-range == zero pad -> simply omitted
                sel[kw, wi, wo] = 1.0
    # [kh, w_in, cin, w_out, cout] -> (KH*W*Cin, Wo*Cout)
    band = jnp.einsum('kwv,hkco->hwcvo', jnp.asarray(sel, w.dtype), w)
    return band.reshape(KH * W * Cin, Wo * Cout)


def _num_tensorcores():
    """Best-effort TensorCore count per chip (v5e/v6e: 1, v7x: 2)."""
    try:
        get_info = getattr(pltpu, "get_tpu_info", None)
        if get_info is not None:
            info = get_info()
            for attr in ("num_cores", "tensorcores_per_chip", "num_tensorcores",
                         "core_count", "cores_per_chip"):
                n = getattr(info, attr, None)
                if isinstance(n, int) and n >= 1:
                    return n
    except Exception:
        pass
    try:
        kind = jax.devices()[0].device_kind.lower()
        if "v7" in kind:
            return 2
    except Exception:
        pass
    return 1


def _choose_tiling(N, Ho, Kdim, Wco, itemsize, n_cores):
    """Pick (grid_steps, BN, N_pad): as few steps as the core count allows,
    padding N up instead of falling back to tiny per-image blocks."""
    budget = 12 * 1024 * 1024  # conservative per-step VMEM budget (dbl-buffered)
    steps = max(1, n_cores)
    while True:
        BN = -(-N // steps)                       # ceil
        per_step = BN * Ho * (Kdim + Wco) * itemsize * 2
        if per_step <= budget or BN == 1:
            break
        steps += max(1, n_cores)
    return steps, BN, BN * steps


def time_distributed_conv2d(x, w, b, *, padding=1):
    """TimeDistributed(Conv2d) forward.

    x: (B, T, Cin, H, W)   float32 (NCHW per timestep, like PyTorch)
    w: (KH, KW, Cin, Cout) conv weights (HWIO)
    b: (Cout,)             conv bias
    returns: (B, T, Cout, Ho, Wo)
    """
    # TODO(synk): the PyTorch `len(x.size()) <= 2` short-circuit path is not
    # meaningful for a Conv2d inner module and is not implemented here.
    B, T, Cin, H, W = x.shape
    KH, KW, _, Cout = w.shape
    N = B * T
    Ho = H + 2 * padding - KH + 1
    Wo = W + 2 * padding - KW + 1
    Wc = W * Cin
    Kdim = KH * Wc
    Wco = Wo * Cout

    itemsize = jnp.dtype(x.dtype).itemsize
    n_cores = _num_tensorcores()
    grid, BN, N_pad = _choose_tiling(N, Ho, Kdim, Wco, itemsize, n_cores)

    # ---- wrapper-side glue (all fused XLA copies, no in-kernel data movement)
    # NCHW -> lane-dense (N, H, W*Cin)
    x_lane = jnp.transpose(x.reshape(N, Cin, H, W), (0, 2, 3, 1)).reshape(N, H, Wc)
    # Pad N up to the grid multiple and do the vertical zero-pad here.
    x_padded = jnp.pad(x_lane, ((0, N_pad - N), (padding, padding), (0, 0)))
    # Fold the KH taps into the contraction dim: (N_pad, Ho, KH*W*Cin).
    cols = [x_padded[:, kh:kh + Ho, :] for kh in range(KH)]
    x_fold = jnp.concatenate(cols, axis=-1).reshape(N_pad * Ho, Kdim)

    wband = _banded_weights(w, W, Wo, padding)          # (Kdim, Wco)
    b_lane = jnp.tile(b, Wo).reshape(1, Wco)            # Cout-minor lane order

    cost = pl.CostEstimate(
        flops=2 * N_pad * Ho * Wo * KH * KW * Cin * Cout,
        transcendentals=0,
        bytes_accessed=(x_fold.size + N_pad * Ho * Wco
                        + wband.size + b_lane.size) * itemsize)

    y_rows = pl.pallas_call(
        _td_conv2d_kernel,
        out_shape=jax.ShapeDtypeStruct((N_pad * Ho, Wco), x.dtype),
        grid_spec=pltpu.PrefetchScalarGridSpec(
            num_scalar_prefetch=0,
            grid=(grid,),
            in_specs=[
                pl.BlockSpec((BN * Ho, Kdim), lambda i: (i, 0)),
                pl.BlockSpec((Kdim, Wco), lambda i: (0, 0)),
                pl.BlockSpec((1, Wco), lambda i: (0, 0)),
            ],
            out_specs=pl.BlockSpec((BN * Ho, Wco), lambda i: (i, 0)),
        ),
        compiler_params=pltpu.CompilerParams(
            dimension_semantics=("parallel",)),
        cost_estimate=cost,
    )(x_fold, wband, b_lane)

    # Glue: lane-dense rows -> NCHW, drop N padding, re-split (B, T).
    y = y_rows.reshape(N_pad, Ho, Wo, Cout)[:N].transpose(0, 3, 1, 2)
    return y.reshape(B, T, Cout, Ho, Wo)


def _reference(x, w, b, *, padding=1):
    """Pure-JAX reference (lax conv) for correctness check."""
    B, T, Cin, H, W = x.shape
    KH, KW, _, Cout = w.shape
    xr = x.reshape(B * T, Cin, H, W)
    w_oihw = jnp.transpose(w, (3, 2, 0, 1))  # HWIO -> OIHW
    y = lax.conv_general_dilated(
        xr, w_oihw, window_strides=(1, 1),
        padding=((padding, padding), (padding, padding)),
        dimension_numbers=("NCHW", "OIHW", "NCHW"))
    y = y + b[None, :, None, None]
    return y.reshape(B, T, Cout, y.shape[2], y.shape[3])


if __name__ == "__main__":
    # Small deterministic shapes: batch=2, seq=8, channels=4, spatial=16x16.
    B, T, Cin, H, W = 2, 8, 4, 16, 16
    Cout, K = 8, 3

    key = jax.random.PRNGKey(0)
    kx, kw, kb = jax.random.split(key, 3)
    x = jax.random.normal(kx, (B, T, Cin, H, W), dtype=jnp.float32)
    w = jax.random.normal(kw, (K, K, Cin, Cout), dtype=jnp.float32) * 0.1
    b = jax.random.normal(kb, (Cout,), dtype=jnp.float32) * 0.1

    y = time_distributed_conv2d(x, w, b, padding=1)
    y = jax.block_until_ready(y)

    y_ref = _reference(x, w, b, padding=1)
    assert y.shape == (B, T, Cout, H, W), y.shape
    assert jnp.allclose(y, y_ref, atol=1e-4, rtol=1e-4), \
        float(jnp.max(jnp.abs(y - y_ref)))

    print("KERNEL_OK")
</pallas_src>

<mosaic_0001>
module attributes {stable_mosaic.version = 11 : i64} {
  func.func @_td_conv2d_kernel(%arg0: i32, %arg1: memref<256x192xf32, #tpu.memory_space<vmem>>, %arg2: memref<192x128xf32, #tpu.memory_space<vmem>>, %arg3: memref<1x128xf32, #tpu.memory_space<vmem>>, %arg4: memref<256x128xf32, #tpu.memory_space<vmem>>) attributes {dimension_semantics = [#tpu.dimension_semantics<parallel>], iteration_bounds = array<i64: 1>, scalar_prefetch = 0 : i64, scratch_operands = 0 : i64, tpu.core_type = #tpu.core_type<tc>, window_params = [{transform_indices = @transform_0, window_bounds = array<i64: 256, 192>}, {pipeline_mode = #tpu.pipeline_mode<synchronous>, transform_indices = @transform_1, window_bounds = array<i64: 192, 128>}, {pipeline_mode = #tpu.pipeline_mode<synchronous>, transform_indices = @transform_2, window_bounds = array<i64: 1, 128>}, {transform_indices = @transform_3, window_bounds = array<i64: 256, 128>}]} {
    %c0 = arith.constant 0 : index
    %c0_0 = arith.constant 0 : index
    %0 = vector.load %arg1[%c0, %c0_0] : memref<256x192xf32, #tpu.memory_space<vmem>>, vector<256x192xf32>
    %c0_1 = arith.constant 0 : index
    %c0_2 = arith.constant 0 : index
    %1 = vector.load %arg2[%c0_1, %c0_2] : memref<192x128xf32, #tpu.memory_space<vmem>>, vector<192x128xf32>
    %cst = arith.constant dense<0.000000e+00> : vector<256x128xf32>
    %2 = tpu.matmul %0, %1, %cst {dimension_numbers = #tpu.dot_dimension_numbers<[1], [0], [0], [1], [0, 0, 1, 1], [], []>} : vector<256x192xf32>, vector<192x128xf32>, vector<256x128xf32> -> vector<256x128xf32>
    %c0_3 = arith.constant 0 : index
    %c0_4 = arith.constant 0 : index
    %3 = vector.load %arg3[%c0_3, %c0_4] : memref<1x128xf32, #tpu.memory_space<vmem>>, vector<1x128xf32>
    %4 = vector.broadcast %3 : vector<1x128xf32> to vector<256x128xf32>
    %5 = arith.addf %2, %4 : vector<256x128xf32>
    %c0_5 = arith.constant 0 : index
    %c0_6 = arith.constant 0 : index
    %6 = vector.load %arg4[%c0_5, %c0_6] : memref<256x128xf32, #tpu.memory_space<vmem>>, vector<256x128xf32>
    tpu.vector_store %arg4[%c0_5, %c0_6], %5 {strides = array<i32>} : memref<256x128xf32, #tpu.memory_space<vmem>>, vector<256x128xf32>,
    return
  }
  func.func @transform_0(%arg0: i32) -> (i32, i32) {
    %c0_i32 = arith.constant 0 : i32
    %c0_i32_0 = arith.constant 0 : i32
    return %arg0, %c0_i32 : i32, i32
  }
  func.func @transform_1(%arg0: i32) -> (i32, i32) {
    %c0_i32 = arith.constant 0 : i32
    %c0_i32_0 = arith.constant 0 : i32
    %c0_i32_1 = arith.constant 0 : i32
    return %c0_i32, %c0_i32_0 : i32, i32
  }
  func.func @transform_2(%arg0: i32) -> (i32, i32) {
    %c0_i32 = arith.constant 0 : i32
    %c0_i32_0 = arith.constant 0 : i32
    %c0_i32_1 = arith.constant 0 : i32
    return %c0_i32, %c0_i32_0 : i32, i32
  }
  func.func @transform_3(%arg0: i32) -> (i32, i32) {
    %c0_i32 = arith.constant 0 : i32
    %c0_i32_0 = arith.constant 0 : i32
    return %arg0, %c0_i32 : i32, i32
  }
}

</mosaic_0001>

<bundles_post_ra>
// kernel: tpu_custom_call.1
= control target key start
LH: loop header
LB: loop body
LE: loop exit
PB: predicated region body
PF: predicated region fallthrough
CT: control target
= control target key end

     0   :  { %v587_v1 = vmov 0.0   ;;  %s995_s0 = inlined_call_operand.vmem [shape: f32[256,192], index: 0, kind: input, shape index: {}]   ;;  %s996_s1 = inlined_call_operand.vmem [shape: f32[192,128], index: 1, kind: input, shape index: {}]   ;;  %s997_s2 = inlined_call_operand.vmem [shape: f32[1,128], index: 2, kind: input, shape index: {}]   ;;  %s998_s3 = inlined_call_operand.hbm [shape: f32[256,128], index: 3, kind: output, shape index: {}]  }
   0x1   :  { %v94_v0 = vld [vmem:[%s996_s1 + $0x78] sm:$0xff]  ;;  %207 = vmatprep.subr.mxu0 %v587_v1  ;;  %513 = vmatprep.subr.mxu1 %v587_v1  ;;  %v93_v2 = vld [vmem:[%s996_s1 + $0x70] sm:$0xff]  ;;  %v92_v3 = vld [vmem:[%s996_s1 + $0x68] sm:$0xff] }
   0x2   :  { %208 = vmatpush1.msra.mxu0 %v94_v0  ;;  %537 = vmatpush1.msra.mxu1 %v94_v0  ;;  %v91_v4 = vld [vmem:[%s996_s1 + $0x60] sm:$0xff]  ;;  %v90_v5 = vld [vmem:[%s996_s1 + $0x58] sm:$0xff]  ;;  %v89_v6 = vld [vmem:[%s996_s1 + $0x50] sm:$0xff] }
   0x3   :  { %209 = vmatprep.subr.mxu0 %v587_v1  ;;  %514 = vmatprep.subr.mxu1 %v587_v1  ;;  %v88_v7 = vld [vmem:[%s996_s1 + $0x48] sm:$0xff]  ;;  %v87_v8 = vld [vmem:[%s996_s1 + $0x40] sm:$0xff]  ;;  %v86_v9 = vld [vmem:[%s996_s1 + $0x38] sm:$0xff] }
   0x4   :  { %210 = vmatpush1.msra.mxu0 %v93_v2  ;;  %538 = vmatpush1.msra.mxu1 %v93_v2  ;;  %v85_v10 = vld [vmem:[%s996_s1 + $0x30] sm:$0xff]  ;;  %v84_v11 = vld [vmem:[%s996_s1 + $0x28] sm:$0xff]  ;;  %v83_v12 = vld [vmem:[%s996_s1 + $0x20] sm:$0xff] }
   0x5   :  { %211 = vmatprep.subr.mxu0 %v587_v1  ;;  %515 = vmatprep.subr.mxu1 %v587_v1  ;;  %v82_v13 = vld [vmem:[%s996_s1 + $0x18] sm:$0xff]  ;;  %v81_v14 = vld [vmem:[%s996_s1 + $0x10] sm:$0xff]  ;;  %v80_v15 = vld [vmem:[%s996_s1 + $0x8] sm:$0xff] }
   0x6   :  { %212 = vmatpush1.msra.mxu0 %v92_v3  ;;  %539 = vmatpush1.msra.mxu1 %v92_v3  ;;  %v79_v16 = vld [vmem:[%s996_s1] sm:$0xff] }
   0x7   :  { %213 = vmatprep.subr.mxu0 %v587_v1  ;;  %516 = vmatprep.subr.mxu1 %v587_v1 }
   0x8   :  { %214 = vmatpush1.msra.mxu0 %v91_v4  ;;  %540 = vmatpush1.msra.mxu1 %v91_v4 }
   0x9   :  { %215 = vmatprep.subr.mxu0 %v587_v1  ;;  %517 = vmatprep.subr.mxu1 %v587_v1 }
   0xa   :  { %216 = vmatpush1.msra.mxu0 %v90_v5  ;;  %541 = vmatpush1.msra.mxu1 %v90_v5 }
   0xb   :  { %217 = vmatprep.subr.mxu0 %v587_v1  ;;  %518 = vmatprep.subr.mxu1 %v587_v1 }
   0xc   :  { %218 = vmatpush1.msra.mxu0 %v89_v6  ;;  %542 = vmatpush1.msra.mxu1 %v89_v6 }
   0xd   :  { %219 = vmatprep.subr.mxu0 %v587_v1  ;;  %519 = vmatprep.subr.mxu1 %v587_v1 }
   0xe   :  { %220 = vmatpush1.msra.mxu0 %v88_v7  ;;  %543 = vmatpush1.msra.mxu1 %v88_v7 }
   0xf   :  { %221 = vmatprep.subr.mxu0 %v587_v1  ;;  %520 = vmatprep.subr.mxu1 %v587_v1 }
  0x10   :  { %222 = vmatpush1.msra.mxu0 %v87_v8  ;;  %544 = vmatpush1.msra.mxu1 %v87_v8 }
  0x11   :  { %223 = vmatprep.subr.mxu0 %v587_v1  ;;  %521 = vmatprep.subr.mxu1 %v587_v1 }
  0x12   :  { %224 = vmatpush1.msra.mxu0 %v86_v9  ;;  %545 = vmatpush1.msra.mxu1 %v86_v9 }
  0x13   :  { %225 = vmatprep.subr.mxu0 %v587_v1  ;;  %522 = vmatprep.subr.mxu1 %v587_v1 }
  0x14   :  { %226 = vmatpush1.msra.mxu0 %v85_v10  ;;  %546 = vmatpush1.msra.mxu1 %v85_v10 }
  0x15   :  { %227 = vmatprep.subr.mxu0 %v587_v1  ;;  %523 = vmatprep.subr.mxu1 %v587_v1 }
  0x16   :  { %228 = vmatpush1.msra.mxu0 %v84_v11  ;;  %547 = vmatpush1.msra.mxu1 %v84_v11 }
  0x17   :  { %229 = vmatprep.subr.mxu0 %v587_v1  ;;  %524 = vmatprep.subr.mxu1 %v587_v1 }
  0x18   :  { %230 = vmatpush1.msra.mxu0 %v83_v12  ;;  %548 = vmatpush1.msra.mxu1 %v83_v12 }
  0x19   :  { %231 = vmatprep.subr.mxu0 %v587_v1  ;;  %525 = vmatprep.subr.mxu1 %v587_v1 }
  0x1a   :  { %232 = vmatpush1.msra.mxu0 %v82_v13  ;;  %549 = vmatpush1.msra.mxu1 %v82_v13 }
  0x1b   :  { %233 = vmatprep.subr.mxu0 %v587_v1  ;;  %526 = vmatprep.subr.mxu1 %v587_v1 }
  0x1c   :  { %234 = vmatpush1.msra.mxu0 %v81_v14  ;;  %550 = vmatpush1.msra.mxu1 %v81_v14 }
  0x1d   :  { %235 = vmatprep.subr.mxu0 %v587_v1  ;;  %527 = vmatprep.subr.mxu1 %v587_v1 }
  0x1e   :  { %8 = vsyncpa [#allocation3], 0  ;;  %236 = vmatpush1.msra.mxu0 %v80_v15  ;;  %551 = vmatpush1.msra.mxu1 %v80_v15  ;;  %v102_v17 = vld [vmem:[%s996_s1 + $0xb8] sm:$0xff]  ;;  %v101_v18 = vld [vmem:[%s996_s1 + $0xb0] sm:$0xff]  ;;  %vm110_vm0 = vcmask 523264  }
  0x1f   :  { %237 = vmatprep.subr.mxu0 %v587_v1  ;;  %528 = vmatprep.subr.mxu1 %v587_v1  ;;  %v100_v19 = vld [vmem:[%s996_s1 + $0xa8] sm:$0xff]  ;;  %v99_v20 = vld [vmem:[%s996_s1 + $0xa0] sm:$0xff]  ;;  %v98_v21 = vld [vmem:[%s996_s1 + $0x98] sm:$0xff] }
  0x20   :  { %238 = vmatpush1.msra.mxu0 %v79_v16  ;;  %552 = vmatpush1.msra.mxu1 %v79_v16  ;;  %v97_v22 = vld [vmem:[%s996_s1 + $0x90] sm:$0xff]  ;;  %v96_v23 = vld [vmem:[%s996_s1 + $0x88] sm:$0xff]  ;;  %v95_v24 = vld [vmem:[%s996_s1 + $0x80] sm:$0xff] }
  0x21   :  { %255 = vmatprep.subr.mxu0 %v587_v1  ;;  %529 = vmatprep.subr.mxu1 %v587_v1  ;;  %v16_v25 = vld [vmem:[%s995_s0 + $0x8] sm:$0xff]  ;;  %v15_v27 = vld [vmem:[%s995_s0] sm:$0xff]  ;;  %v18_v29 = vld [vmem:[%s995_s0 + $0x18] sm:$0xff] }
  0x22   :  { %256 = vmatpush2.msra.mxu0 %v102_v17  ;;  %553 = vmatpush2.msra.mxu1 %v102_v17  ;;  %v48_v26 = vld [vmem:[%s995_s0 + $0x108] sm:$0xff]  ;;  %v47_v28 = vld [vmem:[%s995_s0 + $0x100] sm:$0xff]  ;;  %v50_v30 = vld [vmem:[%s995_s0 + $0x118] sm:$0xff] }
  0x23   :  { %257 = vmatprep.subr.mxu0 %v587_v1  ;;  %530 = vmatprep.subr.mxu1 %v587_v1  ;;  %v17_v31 = vld [vmem:[%s995_s0 + $0x10] sm:$0xff]  ;;  %v20_v33 = vld [vmem:[%s995_s0 + $0x28] sm:$0xff]  ;;  %v19_v35 = vld [vmem:[%s995_s0 + $0x20] sm:$0xff] }
  0x24   :  { %258 = vmatpush2.msra.mxu0 %v101_v18  ;;  %554 = vmatpush2.msra.mxu1 %v101_v18  ;;  %v49_v32 = vld [vmem:[%s995_s0 + $0x110] sm:$0xff]  ;;  %v52_v34 = vld [vmem:[%s995_s0 + $0x128] sm:$0xff]  ;;  %v51_v36 = vld [vmem:[%s995_s0 + $0x120] sm:$0xff] }
  0x25   :  { %259 = vmatprep.subr.mxu0 %v587_v1  ;;  %531 = vmatprep.subr.mxu1 %v587_v1  ;;  %v22_v37 = vld [vmem:[%s995_s0 + $0x38] sm:$0xff]  ;;  %v21_v39 = vld [vmem:[%s995_s0 + $0x30] sm:$0xff]  ;;  %v24_v41 = vld [vmem:[%s995_s0 + $0x48] sm:$0xff] }
  0x26   :  { %260 = vmatpush2.msra.mxu0 %v100_v19  ;;  %555 = vmatpush2.msra.mxu1 %v100_v19  ;;  %v54_v38 = vld [vmem:[%s995_s0 + $0x138] sm:$0xff]  ;;  %v53_v40 = vld [vmem:[%s995_s0 + $0x130] sm:$0xff]  ;;  %v56_v42 = vld [vmem:[%s995_s0 + $0x148] sm:$0xff] }
  0x27   :  { %261 = vmatprep.subr.mxu0 %v587_v1  ;;  %532 = vmatprep.subr.mxu1 %v587_v1  ;;  %v23_v43 = vld [vmem:[%s995_s0 + $0x40] sm:$0xff]  ;;  %v26_v45 = vld [vmem:[%s995_s0 + $0x58] sm:$0xff]  ;;  %v25_v47 = vld [vmem:[%s995_s0 + $0x50] sm:$0xff] }
  0x28   :  { %262 = vmatpush2.msra.mxu0 %v99_v20  ;;  %556 = vmatpush2.msra.mxu1 %v99_v20  ;;  %v55_v44 = vld [vmem:[%s995_s0 + $0x140] sm:$0xff]  ;;  %v58_v46 = vld [vmem:[%s995_s0 + $0x158] sm:$0xff]  ;;  %v57_v48 = vld [vmem:[%s995_s0 + $0x150] sm:$0xff] }
  0x29   :  { %263 = vmatprep.subr.mxu0 %v587_v1  ;;  %533 = vmatprep.subr.mxu1 %v587_v1  ;;  %v28_v49 = vld [vmem:[%s995_s0 + $0x68] sm:$0xff]  ;;  %v27_v51 = vld [vmem:[%s995_s0 + $0x60] sm:$0xff]  ;;  %v30_v53 = vld [vmem:[%s995_s0 + $0x78] sm:$0xff] }
  0x2a   :  { %264 = vmatpush2.msra.mxu0 %v98_v21  ;;  %557 = vmatpush2.msra.mxu1 %v98_v21  ;;  %v60_v50 = vld [vmem:[%s995_s0 + $0x168] sm:$0xff]  ;;  %v59_v52 = vld [vmem:[%s995_s0 + $0x160] sm:$0xff]  ;;  %v62_v54 = vld [vmem:[%s995_s0 + $0x178] sm:$0xff] }
  0x2b   :  { %265 = vmatprep.subr.mxu0 %v587_v1  ;;  %534 = vmatprep.subr.mxu1 %v587_v1  ;;  %v29_v55 = vld [vmem:[%s995_s0 + $0x70] sm:$0xff]  ;;  %v32_v57 = vld [vmem:[%s995_s0 + $0x88] sm:$0xff]  ;;  %v31_v59 = vld [vmem:[%s995_s0 + $0x80] sm:$0xff] }
  0x2c   :  { %266 = vmatpush2.msra.mxu0 %v97_v22  ;;  %558 = vmatpush2.msra.mxu1 %v97_v22  ;;  %v61_v56 = vld [vmem:[%s995_s0 + $0x170] sm:$0xff]  ;;  %v64_v58 = vld [vmem:[%s995_s0 + $0x188] sm:$0xff]  ;;  %v63_v60 = vld [vmem:[%s995_s0 + $0x180] sm:$0xff] }
  0x2d   :  { %267 = vmatprep.subr.mxu0 %v587_v1  ;;  %535 = vmatprep.subr.mxu1 %v587_v1  ;;  %v34_v61 = vld [vmem:[%s995_s0 + $0x98] sm:$0xff]  ;;  %v33_v63 = vld [vmem:[%s995_s0 + $0x90] sm:$0xff]  ;;  %v68_v2 = vld [vmem:[%s995_s0 + $0x1a8] sm:$0xff] }
  0x2e   :  { %268 = vmatpush2.msra.mxu0 %v96_v23  ;;  %559 = vmatpush2.msra.mxu1 %v96_v23  ;;  %v66_v62 = vld [vmem:[%s995_s0 + $0x198] sm:$0xff]  ;;  %v65_v0 = vld [vmem:[%s995_s0 + $0x190] sm:$0xff]  ;;  %v35_v3 = vld [vmem:[%s995_s0 + $0xa0] sm:$0xff] }
  0x2f   :  { %269 = vmatprep.subr.mxu0 %v587_v1  ;;  %536 = vmatprep.subr.mxu1 %v587_v1  ;;  %v36_v1 = vld [vmem:[%s995_s0 + $0xa8] sm:$0xff]  ;;  %v67_v4 = vld [vmem:[%s995_s0 + $0x1a0] sm:$0xff]  ;;  %v38_v5 = vld [vmem:[%s995_s0 + $0xb8] sm:$0xff] }
  0x30   :  { %270 = vmatpush2.msra.mxu0 %v95_v24  ;;  %560 = vmatpush2.msra.mxu1 %v95_v24  ;;  %v70_v6 = vld [vmem:[%s995_s0 + $0x1b8] sm:$0xff]  ;;  %v37_v7 = vld [vmem:[%s995_s0 + $0xb0] sm:$0xff]  ;;  %v40_v9 = vld [vmem:[%s995_s0 + $0xc8] sm:$0xff] }
  0x31   :  { %481 = vmatprep.mubr.msk.f32.mxu0 %vm110_vm0, %v16_v25  ;;  %497 = vmatprep.mubr.msk.f32.mxu1 %vm110_vm0, %v48_v26  ;;  %v69_v8 = vld [vmem:[%s995_s0 + $0x1b0] sm:$0xff]  ;;  %v72_v10 = vld [vmem:[%s995_s0 + $0x1c8] sm:$0xff]  ;;  %v39_v11 = vld [vmem:[%s995_s0 + $0xc0] sm:$0xff] }
  0x32   :  { %272 = vmatmul.mubr.f32.vlgmr.msra.gmra.mxu0 %v15_v27  ;;  %352 = vmatmul.mubr.f32.vlgmr.msra.gmra.mxu1 %v47_v28  ;;  %v71_v12 = vld [vmem:[%s995_s0 + $0x1c0] sm:$0xff]  ;;  %v42_v13 = vld [vmem:[%s995_s0 + $0xd8] sm:$0xff]  ;;  %v41_v15 = vld [vmem:[%s995_s0 + $0xd0] sm:$0xff] }
  0x33   :  { %482 = vmatprep.mubr.msk.f32.mxu0 %vm110_vm0, %v18_v29  ;;  %498 = vmatprep.mubr.msk.f32.mxu1 %vm110_vm0, %v50_v30  ;;  %v74_v14 = vld [vmem:[%s995_s0 + $0x1d8] sm:$0xff]  ;;  %v73_v16 = vld [vmem:[%s995_s0 + $0x1d0] sm:$0xff]  ;;  %v44_v17 = vld [vmem:[%s995_s0 + $0xe8] sm:$0xff] }
  0x34   :  { %v76_v18 = vld [vmem:[%s995_s0 + $0x1e8] sm:$0xff]  ;;  %v43_v19 = vld [vmem:[%s995_s0 + $0xe0] sm:$0xff]  ;;  %v46_v21 = vld [vmem:[%s995_s0 + $0xf8] sm:$0xff] }
  0x35   :  { %v75_v20 = vld [vmem:[%s995_s0 + $0x1e0] sm:$0xff]  ;;  %v78_v22 = vld [vmem:[%s995_s0 + $0x1f8] sm:$0xff]  ;;  %v45_v23 = vld [vmem:[%s995_s0 + $0xf0] sm:$0xff] }
  0x36   :  { %277 = vmatmul.mubr.f32.gmra.mxu0 %v17_v31  ;;  %357 = vmatmul.mubr.f32.gmra.mxu1 %v49_v32  ;;  %v77_v24 = vld [vmem:[%s995_s0 + $0x1f0] sm:$0xff]  ;;  %v958_v25 = vld [vmem:[%s997_s2] ss:$0 sm:$0xff]  ;;  %s588_s0 = smov [#allocation2]  }
  0x37   :  { %483 = vmatprep.mubr.msk.f32.mxu0 %vm110_vm0, %v20_v33  ;;  %499 = vmatprep.mubr.msk.f32.mxu1 %vm110_vm0, %v52_v34  ;;  %s469_s2 = sshll.u32 %s588_s0, 4  ;;  %s470_s2 = int_to_ptr.vmem [resolvable:$true] %s469_s2 }
  0x38   :  { %s565_s23 = scalar_lea.vmem %s470_s2, 4096  ;;  %p570_p1 = scmp.lt.s32.totalorder %s470_s2, %s470_s2 }
  0x39   :  { %p566_p0 = scmp.ne.s32.totalorder %s470_s2, %s565_s23  ;;  %p571_p2 = scmp.lt.s32.totalorder %s565_s23, %s565_s23 }
  0x3a   :  { %282 = vmatmul.mubr.f32.gmra.mxu0 %v19_v35  ;;  %362 = vmatmul.mubr.f32.gmra.mxu1 %v51_v36 }
  0x3b   :  { %484 = vmatprep.mubr.msk.f32.mxu0 %vm110_vm0, %v22_v37  ;;  %500 = vmatprep.mubr.msk.f32.mxu1 %vm110_vm0, %v54_v38  ;;  %p572_p3 = por %p571_p2, %p570_p1 }
  0x3d   :  { %p573_p4 = pnand %p572_p3, %p566_p0 }
  0x3e   :  { %287 = vmatmul.mubr.f32.gmra.mxu0 %v21_v39  ;;  %367 = vmatmul.mubr.f32.gmra.mxu1 %v53_v40 }
  0x3f   :  { %485 = vmatprep.mubr.msk.f32.mxu0 %vm110_vm0, %v24_v41  ;;  %501 = vmatprep.mubr.msk.f32.mxu1 %vm110_vm0, %v56_v42 }
  0x42   :  { %292 = vmatmul.mubr.f32.gmra.mxu0 %v23_v43  ;;  %372 = vmatmul.mubr.f32.gmra.mxu1 %v55_v44 }
  0x43   :  { %486 = vmatprep.mubr.msk.f32.mxu0 %vm110_vm0, %v26_v45  ;;  %502 = vmatprep.mubr.msk.f32.mxu1 %vm110_vm0, %v58_v46 }
  0x46   :  { %297 = vmatmul.mubr.f32.gmra.mxu0 %v25_v47  ;;  %377 = vmatmul.mubr.f32.gmra.mxu1 %v57_v48 }
  0x47   :  { %487 = vmatprep.mubr.msk.f32.mxu0 %vm110_vm0, %v28_v49  ;;  %503 = vmatprep.mubr.msk.f32.mxu1 %vm110_vm0, %v60_v50 }
  0x4a   :  { %302 = vmatmul.mubr.f32.gmra.mxu0 %v27_v51  ;;  %382 = vmatmul.mubr.f32.gmra.mxu1 %v59_v52 }
  0x4b   :  { %488 = vmatprep.mubr.msk.f32.mxu0 %vm110_vm0, %v30_v53  ;;  %504 = vmatprep.mubr.msk.f32.mxu1 %vm110_vm0, %v62_v54 }
  0x4e   :  { %307 = vmatmul.mubr.f32.gmra.mxu0 %v29_v55  ;;  %387 = vmatmul.mubr.f32.gmra.mxu1 %v61_v56 }
  0x4f   :  { %489 = vmatprep.mubr.msk.f32.mxu0 %vm110_vm0, %v32_v57  ;;  %505 = vmatprep.mubr.msk.f32.mxu1 %vm110_vm0, %v64_v58 }
  0x52   :  { %312 = vmatmul.mubr.f32.gmra.mxu0 %v31_v59  ;;  %392 = vmatmul.mubr.f32.gmra.mxu1 %v63_v60 }
  0x53   :  { %490 = vmatprep.mubr.msk.f32.mxu0 %vm110_vm0, %v34_v61  ;;  %506 = vmatprep.mubr.msk.f32.mxu1 %vm110_vm0, %v66_v62 }
  0x56   :  { %317 = vmatmul.mubr.f32.gmra.mxu0 %v33_v63  ;;  %397 = vmatmul.mubr.f32.gmra.mxu1 %v65_v0 }
  0x57   :  { %491 = vmatprep.mubr.msk.f32.mxu0 %vm110_vm0, %v36_v1  ;;  %507 = vmatprep.mubr.msk.f32.mxu1 %vm110_vm0, %v68_v2 }
  0x5a   :  { %322 = vmatmul.mubr.f32.gmra.mxu0 %v35_v3  ;;  %402 = vmatmul.mubr.f32.gmra.mxu1 %v67_v4 }
  0x5b   :  { %492 = vmatprep.mubr.msk.f32.mxu0 %vm110_vm0, %v38_v5  ;;  %508 = vmatprep.mubr.msk.f32.mxu1 %vm110_vm0, %v70_v6 }
  0x5e   :  { %327 = vmatmul.mubr.f32.gmra.mxu0 %v37_v7  ;;  %407 = vmatmul.mubr.f32.gmra.mxu1 %v69_v8 }
  0x5f   :  { %493 = vmatprep.mubr.msk.f32.mxu0 %vm110_vm0, %v40_v9  ;;  %509 = vmatprep.mubr.msk.f32.mxu1 %vm110_vm0, %v72_v10 }
  0x62   :  { %332 = vmatmul.mubr.f32.gmra.mxu0 %v39_v11  ;;  %412 = vmatmul.mubr.f32.gmra.mxu1 %v71_v12 }
  0x63   :  { %494 = vmatprep.mubr.msk.f32.mxu0 %vm110_vm0, %v42_v13  ;;  %510 = vmatprep.mubr.msk.f32.mxu1 %vm110_vm0, %v74_v14 }
  0x66   :  { %337 = vmatmul.mubr.f32.gmra.mxu0 %v41_v15  ;;  %417 = vmatmul.mubr.f32.gmra.mxu1 %v73_v16 }
  0x67   :  { %495 = vmatprep.mubr.msk.f32.mxu0 %vm110_vm0, %v44_v17  ;;  %511 = vmatprep.mubr.msk.f32.mxu1 %vm110_vm0, %v76_v18 }
  0x6a   :  { %342 = vmatmul.mubr.f32.gmra.mxu0 %v43_v19  ;;  %422 = vmatmul.mubr.f32.gmra.mxu1 %v75_v20 }
  0x6b   :  { %496 = vmatprep.mubr.msk.f32.mxu0 %vm110_vm0, %v46_v21  ;;  %512 = vmatprep.mubr.msk.f32.mxu1 %vm110_vm0, %v78_v22 }
  0x6e   :  { %347 = vmatmul.mubr.f32.gmra.mxu0 %v45_v23  ;;  %427 = vmatmul.mubr.f32.gmra.mxu1 %v77_v24 }
  0xf2   :  { %v273_v26 = vpop.f32.mrf.mxu0  ;;  %v353_v27 = vpop.f32.mrf.mxu1 }
  0xf3   :  { %v274_v28 = vadd.f32 %v958_v25, %v273_v26  ;;  %v354_v29 = vadd.f32 %v958_v25, %v353_v27 }
  0xf4   :  { %v275_v30 = vpop.f32.mrf.mxu0  ;;  %v355_v31 = vpop.f32.mrf.mxu1 }
  0xf5   :  { %432 = vst [vmem:[#allocation2] sm:$0xff] %v274_v28  ;;  %448 = vst [vmem:[#allocation2 + $0x80] sm:$0xff] %v354_v29 }
  0xf6   :  { %v278_v32 = vpop.f32.mrf.mxu0  ;;  %v358_v33 = vpop.f32.mrf.mxu1 }
  0xf7   :  { %v279_v34 = vadd.f32 %v958_v25, %v278_v32  ;;  %v359_v35 = vadd.f32 %v958_v25, %v358_v33 }
  0xf8   :  { %v280_v36 = vpop.f32.mrf.mxu0  ;;  %v360_v37 = vpop.f32.mrf.mxu1 }
  0xf9   :  { %433 = vst [vmem:[#allocation2 + $0x8] sm:$0xff] %v279_v34  ;;  %449 = vst [vmem:[#allocation2 + $0x88] sm:$0xff] %v359_v35 }
  0xfa   :  { %v283_v38 = vpop.f32.mrf.mxu0  ;;  %v363_v39 = vpop.f32.mrf.mxu1 }
  0xfb   :  { %v284_v40 = vadd.f32 %v958_v25, %v283_v38  ;;  %v364_v41 = vadd.f32 %v958_v25, %v363_v39 }
  0xfc   :  { %v285_v42 = vpop.f32.mrf.mxu0  ;;  %v365_v43 = vpop.f32.mrf.mxu1 }
  0xfd   :  { %434 = vst [vmem:[#allocation2 + $0x10] sm:$0xff] %v284_v40  ;;  %450 = vst [vmem:[#allocation2 + $0x90] sm:$0xff] %v364_v41 }
  0xfe   :  { %v288_v44 = vpop.f32.mrf.mxu0  ;;  %v368_v45 = vpop.f32.mrf.mxu1 }
  0xff   :  { %v289_v46 = vadd.f32 %v958_v25, %v288_v44  ;;  %v369_v47 = vadd.f32 %v958_v25, %v368_v45 }
 0x100   :  { %v290_v48 = vpop.f32.mrf.mxu0  ;;  %v370_v49 = vpop.f32.mrf.mxu1 }
 0x101   :  { %435 = vst [vmem:[#allocation2 + $0x18] sm:$0xff] %v289_v46  ;;  %451 = vst [vmem:[#allocation2 + $0x98] sm:$0xff] %v369_v47 }
 0x102   :  { %v293_v50 = vpop.f32.mrf.mxu0  ;;  %v373_v51 = vpop.f32.mrf.mxu1 }
 0x103   :  { %v294_v52 = vadd.f32 %v958_v25, %v293_v50  ;;  %v374_v53 = vadd.f32 %v958_v25, %v373_v51 }
 0x104   :  { %v295_v54 = vpop.f32.mrf.mxu0  ;;  %v375_v55 = vpop.f32.mrf.mxu1 }
 0x105   :  { %436 = vst [vmem:[#allocation2 + $0x20] sm:$0xff] %v294_v52  ;;  %452 = vst [vmem:[#allocation2 + $0xa0] sm:$0xff] %v374_v53 }
 0x106   :  { %v298_v56 = vpop.f32.mrf.mxu0  ;;  %v378_v57 = vpop.f32.mrf.mxu1 }
 0x107   :  { %v299_v58 = vadd.f32 %v958_v25, %v298_v56  ;;  %v379_v59 = vadd.f32 %v958_v25, %v378_v57 }
 0x108   :  { %v300_v60 = vpop.f32.mrf.mxu0  ;;  %v380_v61 = vpop.f32.mrf.mxu1 }
 0x109   :  { %437 = vst [vmem:[#allocation2 + $0x28] sm:$0xff] %v299_v58  ;;  %453 = vst [vmem:[#allocation2 + $0xa8] sm:$0xff] %v379_v59 }
 0x10a   :  { %v303_v62 = vpop.f32.mrf.mxu0  ;;  %v383_v63 = vpop.f32.mrf.mxu1 }
 0x10b   :  { %v304_v0 = vadd.f32 %v958_v25, %v303_v62  ;;  %v384_v1 = vadd.f32 %v958_v25, %v383_v63 }
 0x10c   :  { %v305_v2 = vpop.f32.mrf.mxu0  ;;  %v385_v3 = vpop.f32.mrf.mxu1 }
 0x10d   :  { %438 = vst [vmem:[#allocation2 + $0x30] sm:$0xff] %v304_v0  ;;  %454 = vst [vmem:[#allocation2 + $0xb0] sm:$0xff] %v384_v1 }
 0x10e   :  { %v308_v4 = vpop.f32.mrf.mxu0  ;;  %v388_v5 = vpop.f32.mrf.mxu1 }
 0x10f   :  { %v309_v6 = vadd.f32 %v958_v25, %v308_v4  ;;  %v389_v7 = vadd.f32 %v958_v25, %v388_v5 }
 0x110   :  { %v310_v8 = vpop.f32.mrf.mxu0  ;;  %v390_v9 = vpop.f32.mrf.mxu1 }
 0x111   :  { %439 = vst [vmem:[#allocation2 + $0x38] sm:$0xff] %v309_v6  ;;  %455 = vst [vmem:[#allocation2 + $0xb8] sm:$0xff] %v389_v7 }
 0x112   :  { %v313_v10 = vpop.f32.mrf.mxu0  ;;  %v393_v11 = vpop.f32.mrf.mxu1 }
 0x113   :  { %v314_v12 = vadd.f32 %v958_v25, %v313_v10  ;;  %v394_v13 = vadd.f32 %v958_v25, %v393_v11 }
 0x114   :  { %v315_v14 = vpop.f32.mrf.mxu0  ;;  %v395_v15 = vpop.f32.mrf.mxu1 }
 0x115   :  { %440 = vst [vmem:[#allocation2 + $0x40] sm:$0xff] %v314_v12  ;;  %456 = vst [vmem:[#allocation2 + $0xc0] sm:$0xff] %v394_v13 }
 0x116   :  { %v318_v16 = vpop.f32.mrf.mxu0  ;;  %v398_v17 = vpop.f32.mrf.mxu1 }
 0x117   :  { %v319_v18 = vadd.f32 %v958_v25, %v318_v16  ;;  %v399_v19 = vadd.f32 %v958_v25, %v398_v17 }
 0x118   :  { %v320_v20 = vpop.f32.mrf.mxu0  ;;  %v400_v21 = vpop.f32.mrf.mxu1 }
 0x119   :  { %441 = vst [vmem:[#allocation2 + $0x48] sm:$0xff] %v319_v18  ;;  %457 = vst [vmem:[#allocation2 + $0xc8] sm:$0xff] %v399_v19 }
 0x11a   :  { %v323_v22 = vpop.f32.mrf.mxu0  ;;  %v403_v23 = vpop.f32.mrf.mxu1 }
 0x11b   :  { %v324_v24 = vadd.f32 %v958_v25, %v323_v22  ;;  %v404_v26 = vadd.f32 %v958_v25, %v403_v23 }
 0x11c   :  { %v325_v27 = vpop.f32.mrf.mxu0  ;;  %v405_v28 = vpop.f32.mrf.mxu1 }
 0x11d   :  { %442 = vst [vmem:[#allocation2 + $0x50] sm:$0xff] %v324_v24  ;;  %458 = vst [vmem:[#allocation2 + $0xd0] sm:$0xff] %v404_v26 }
 0x11e   :  { %v328_v29 = vpop.f32.mrf.mxu0  ;;  %v408_v30 = vpop.f32.mrf.mxu1 }
 0x11f   :  { %v329_v31 = vadd.f32 %v958_v25, %v328_v29  ;;  %v409_v32 = vadd.f32 %v958_v25, %v408_v30 }
 0x120   :  { %v330_v33 = vpop.f32.mrf.mxu0  ;;  %v410_v34 = vpop.f32.mrf.mxu1 }
 0x121   :  { %443 = vst [vmem:[#allocation2 + $0x58] sm:$0xff] %v329_v31  ;;  %459 = vst [vmem:[#allocation2 + $0xd8] sm:$0xff] %v409_v32 }
 0x122   :  { %v333_v35 = vpop.f32.mrf.mxu0  ;;  %v413_v36 = vpop.f32.mrf.mxu1 }
 0x123   :  { %v334_v37 = vadd.f32 %v958_v25, %v333_v35  ;;  %v414_v38 = vadd.f32 %v958_v25, %v413_v36 }
 0x124   :  { %v335_v39 = vpop.f32.mrf.mxu0  ;;  %v415_v40 = vpop.f32.mrf.mxu1 }
 0x125   :  { %444 = vst [vmem:[#allocation2 + $0x60] sm:$0xff] %v334_v37  ;;  %460 = vst [vmem:[#allocation2 + $0xe0] sm:$0xff] %v414_v38 }
 0x126   :  { %v338_v41 = vpop.f32.mrf.mxu0  ;;  %v418_v42 = vpop.f32.mrf.mxu1 }
 0x127   :  { %v339_v43 = vadd.f32 %v958_v25, %v338_v41  ;;  %v419_v44 = vadd.f32 %v958_v25, %v418_v42 }
 0x128   :  { %v340_v45 = vpop.f32.mrf.mxu0  ;;  %v420_v46 = vpop.f32.mrf.mxu1 }
 0x129   :  { %445 = vst [vmem:[#allocation2 + $0x68] sm:$0xff] %v339_v43  ;;  %461 = vst [vmem:[#allocation2 + $0xe8] sm:$0xff] %v419_v44 }
 0x12a   :  { %v343_v47 = vpop.f32.mrf.mxu0  ;;  %v423_v48 = vpop.f32.mrf.mxu1 }
 0x12b   :  { %v344_v49 = vadd.f32 %v958_v25, %v343_v47  ;;  %v424_v50 = vadd.f32 %v958_v25, %v423_v48 }
 0x12c   :  { %v345_v51 = vpop.f32.mrf.mxu0  ;;  %v425_v52 = vpop.f32.mrf.mxu1 }
 0x12d   :  { %446 = vst [vmem:[#allocation2 + $0x70] sm:$0xff] %v344_v49  ;;  %462 = vst [vmem:[#allocation2 + $0xf0] sm:$0xff] %v424_v50 }
 0x12e   :  { %v348_v53 = vpop.f32.mrf.mxu0  ;;  %v428_v54 = vpop.f32.mrf.mxu1 }
 0x12f   :  { %v349_v55 = vadd.f32 %v958_v25, %v348_v53  ;;  %v429_v56 = vadd.f32 %v958_v25, %v428_v54 }
 0x130   :  { %v350_v57 = vpop.f32.mrf.mxu0  ;;  %v430_v58 = vpop.f32.mrf.mxu1 }
 0x131   :  { %447 = vst [vmem:[#allocation2 + $0x78] sm:$0xff] %v349_v55  ;;  %463 = vst [vmem:[#allocation2 + $0xf8] sm:$0xff] %v429_v56 }
 0x132   :  { %576 = shalt.err (!%p573_p4)
}
 0x133   :  { %s589_s24 = smov 128   ;;  %s590_s25 = smov 8  }
 0x134   :  { %475 = dma.vmem_to_hbm [thread:$0]  %s470_s2, 4096, %s998_s3, [#allocation3], %s589_s24, %s589_s24, %s590_s25  }
 0x135   :  { %585 = dma.done.wait [#allocation3], 4096  }
 0x136   :  { %586 = vsyncadd [#allocation3], 4294963200 }
 0x137   :  { %479 = vsyncpa [#allocation3], 1 }

</bundles_post_ra>
